<compile_context>
chip_gen: v6e
topology: v6e:2x2x1
jax: 0.10.0
libtpu: 0.0.40
codegen_flags: <defaults>
</compile_context>

<pallas_src>
import numpy as np
import jax
import jax.numpy as jnp
from jax.experimental import pallas as pl
from jax.experimental.pallas import tpu as pltpu

NUM_CONV_LAYERS = 3
KSIZE = 3          # conv_kernel_size (padding=1)
HIDDEN = 32        # hidden_dim (shrunk from 128 for a small test)
CHUNK = 3          # chunk_size
BN_EPS = 1e-5


def _disc_kernel(x_ref, w0_ref, w_ref, b_ref, s_ref, t_ref,
                 wp_ref, bp_ref, wf_ref, bf_ref, out_ref):
    """Whole forward pass, all activations register-resident (small shapes)."""
    B, L, _ = x_ref.shape
    H = w0_ref.shape[1]

    zr = jnp.zeros((B, 1, H), jnp.float32)

    # ---- layer 0: Conv1d(1, H, 3, pad=1) as VPU outer products -------------
    x = x_ref[...]                                   # (B, L, 1)
    c0 = x * w0_ref[0:1, :]                          # x[t] * w0[k], (B, L, H)
    c1 = x * w0_ref[1:2, :]
    c2 = x * w0_ref[2:3, :]
    # out[t] = x[t-1]*w0[0] + x[t]*w0[1] + x[t+1]*w0[2]  (zero "same" padding)
    h = (jnp.concatenate([zr, c0[:, :L - 1, :]], axis=1)
         + c1
         + jnp.concatenate([c2[:, 1:, :], zr], axis=1))
    h = jnp.maximum(h + b_ref[0], 0.0)               # conv bias + ReLU
    h = h * s_ref[0] + t_ref[0]                      # BN (eval, folded affine)
    # TODO(synk): Dropout is identity (eval mode); training-mode stochastic
    # dropout and batch-statistics BatchNorm are not implemented.

    # ---- layers 1..2: fused-tap conv = one depth-(K*H) matmul per layer ----
    for l in range(1, NUM_CONV_LAYERS):
        hm1 = jnp.concatenate([zr, h[:, :L - 1, :]], axis=1)   # h[t-1]
        hp1 = jnp.concatenate([h[:, 1:, :], zr], axis=1)       # h[t+1]
        slab = jnp.concatenate([hm1, h, hp1], axis=2).reshape(B * L, KSIZE * H)
        acc = jnp.dot(slab, w_ref[l - 1], preferred_element_type=jnp.float32)
        acc = jnp.maximum(acc + b_ref[l], 0.0)
        if l < NUM_CONV_LAYERS - 1:
            acc = acc * s_ref[l] + t_ref[l]   # last layer's BN folded into Wp/bp
        h = acc.reshape(B, L, H)

    # ---- pre_fc_conv (Conv1d(H, H, CHUNK), valid) evaluated at EVERY t -----
    # Chunk-aligned positions are selected outside the kernel from the
    # host-static seq_lens; positions past L-CHUNK use zero taps and are
    # never selected, so they are harmless.
    zr2 = jnp.zeros((B, 2, H), jnp.float32)
    t1 = jnp.concatenate([h[:, 1:, :], zr], axis=1)            # h[t+1]
    t2 = jnp.concatenate([h[:, 2:, :], zr2], axis=1)           # h[t+2]
    slab = jnp.concatenate([h, t1, t2], axis=2).reshape(B * L, KSIZE * H)
    acc = jnp.dot(slab, wp_ref[...], preferred_element_type=jnp.float32)
    acc = jnp.maximum(acc + bp_ref[...], 0.0)                  # + folded bias, ReLU

    # ---- fc: VPU multiply + lane reduction (no N=1 MXU pass) ---------------
    score = jnp.sum(acc.reshape(B, L, H) * wf_ref[...], axis=2)   # (B, L)
    out_ref[...] = score + bf_ref[...]


def patch_discriminator_forward(x, seq_lens, kparams):
    """x: (B, L) float32 durations. seq_lens: host-side ints (static)."""
    B, L = x.shape

    # host-static chunk bookkeeping (matches range(0, sl - CHUNK + 1, CHUNK))
    n_per_row = []
    for b in range(B):
        sl = int(seq_lens[b])
        n_per_row.append((sl - CHUNK) // CHUNK + 1 if sl >= CHUNK else 0)
    if sum(n_per_row) == 0:
        return jnp.zeros((0,), jnp.float32)

    vmem = pl.BlockSpec(memory_space=pltpu.MemorySpace.VMEM)
    scores = pl.pallas_call(
        _disc_kernel,
        out_shape=jax.ShapeDtypeStruct((B, L), jnp.float32),
        in_specs=[vmem] * 10,
        out_specs=vmem,
    )(x[:, :, None].astype(jnp.float32),
      kparams["w0"], kparams["Wf"], kparams["b"],
      kparams["bn_scale01"], kparams["bn_shift01"],
      kparams["Wp_f"], kparams["bp_f"], kparams["wf_row"], kparams["bf"])

    # tiny static gather of the chunk-aligned positions (outside the kernel,
    # so the kernel compilation is independent of seq_lens)
    pieces = [scores[b, 0:n_per_row[b] * CHUNK:CHUNK]
              for b in range(B) if n_per_row[b] > 0]
    return jnp.concatenate(pieces, axis=0)


def init_params(key):
    """Deterministic synthetic parameters (shapes match the torch module)."""
    H = HIDDEN
    ks = jax.random.split(key, 12)
    W = jnp.zeros((NUM_CONV_LAYERS, KSIZE, H, H), jnp.float32)
    # layer 0: Conv1d(1, H, 3) -> only input channel 0 is populated
    W = W.at[0, :, 0, :].set(0.3 * jax.random.normal(ks[0], (KSIZE, H), jnp.float32))
    for l in range(1, NUM_CONV_LAYERS):
        W = W.at[l].set(0.1 * jax.random.normal(ks[l], (KSIZE, H, H), jnp.float32))
    b = 0.1 * jax.random.normal(ks[3], (NUM_CONV_LAYERS, 1, H), jnp.float32)
    gamma = 0.5 + jax.random.uniform(ks[4], (NUM_CONV_LAYERS, 1, H), jnp.float32)
    beta = 0.1 * jax.random.normal(ks[5], (NUM_CONV_LAYERS, 1, H), jnp.float32)
    rmean = 0.1 * jax.random.normal(ks[6], (NUM_CONV_LAYERS, 1, H), jnp.float32)
    rvar = 0.5 + jax.random.uniform(ks[7], (NUM_CONV_LAYERS, 1, H), jnp.float32)
    bn_scale = gamma / jnp.sqrt(rvar + BN_EPS)          # eval-mode BN folded
    bn_shift = beta - rmean * bn_scale
    Wp = 0.1 * jax.random.normal(ks[8], (CHUNK, H, H), jnp.float32)
    bp = 0.1 * jax.random.normal(ks[9], (1, H), jnp.float32)
    wf = 0.2 * jax.random.normal(ks[10], (H, 1), jnp.float32)
    bf = 0.1 * jax.random.normal(ks[11], (1, 1), jnp.float32)
    return dict(W=W, b=b, bn_scale=bn_scale, bn_shift=bn_shift,
                Wp=Wp, bp=bp, wf=wf, bf=bf)


def prepare_kernel_params(P):
    """Host-side refactor of the torch-layout params into kernel-ready form."""
    H = HIDDEN
    w0 = P["W"][0, :, 0, :]                                     # (KSIZE, H)
    Wf = P["W"][1:].reshape(NUM_CONV_LAYERS - 1, KSIZE * H, H)  # fused taps
    # fold the LAST conv layer's eval-mode BN affine into the (un-padded)
    # chunk conv: y2 = s2*r2 + t2  =>  sum_k y2 @ Wp[k] = sum_k r2 @ (s2*Wp[k])
    #                                                     + (sum_k t2 @ Wp[k])
    s2 = P["bn_scale"][-1][0]
    t2 = P["bn_shift"][-1][0]
    Wp_folded = P["Wp"] * s2[None, :, None]                     # scale input rows
    bp_folded = P["bp"] + jnp.einsum(
        "c,kco->o", t2, P["Wp"],
        precision=jax.lax.Precision.HIGHEST,
        preferred_element_type=jnp.float32)[None, :]
    return dict(
        w0=w0, Wf=Wf, b=P["b"],
        bn_scale01=P["bn_scale"][:NUM_CONV_LAYERS - 1],
        bn_shift01=P["bn_shift"][:NUM_CONV_LAYERS - 1],
        Wp_f=Wp_folded.reshape(CHUNK * H, H), bp_f=bp_folded,
        wf_row=P["wf"].T, bf=P["bf"])


def ref_forward(x, seq_lens, P):
    """Pure-JAX reference of the same forward pass (unfolded params)."""
    B, L = x.shape
    H = HIDDEN
    h = jnp.zeros((B, L, H), jnp.float32).at[:, :, 0].set(x.astype(jnp.float32))
    for l in range(NUM_CONV_LAYERS):
        hp = jnp.pad(h, ((0, 0), (1, 1), (0, 0)))
        acc = sum(jnp.einsum("blc,co->blo", hp[:, k:k + L, :], P["W"][l, k],
                             preferred_element_type=jnp.float32)
                  for k in range(KSIZE))
        acc = acc + P["b"][l]
        acc = jnp.maximum(acc, 0.0)
        acc = acc * P["bn_scale"][l] + P["bn_shift"][l]
        h = acc
    chunks = []
    for b in range(B):
        sl = int(seq_lens[b])
        for s in range(0, sl - CHUNK + 1, CHUNK):
            chunks.append(h[b, s:s + CHUNK, :])
    if not chunks:
        return jnp.zeros((0,), jnp.float32)
    C = jnp.stack(chunks, axis=0)
    acc = sum(jnp.einsum("nc,co->no", C[:, k, :], P["Wp"][k],
                         preferred_element_type=jnp.float32)
              for k in range(CHUNK)) + P["bp"]
    acc = jnp.maximum(acc, 0.0)
    return (acc @ P["wf"] + P["bf"])[:, 0]


if __name__ == "__main__":
    key = jax.random.PRNGKey(0)
    kx, kp = jax.random.split(key)
    B, L = 2, 16
    x = jax.random.uniform(kx, (B, L), jnp.float32)          # durations
    seq_lens = np.array([16, 10], dtype=np.int32)            # host-static lengths
    P = init_params(kp)
    KP = prepare_kernel_params(P)

    out = patch_discriminator_forward(x, seq_lens, KP)
    out = jax.block_until_ready(out)                          # shape (8,)

    ref = jax.block_until_ready(ref_forward(x, seq_lens, P))
    np.testing.assert_allclose(np.asarray(out), np.asarray(ref),
                               rtol=1e-2, atol=1e-2)
    print("KERNEL_OK")
</pallas_src>

<mosaic_0001>
module attributes {stable_mosaic.version = 11 : i64} {
  func.func @_disc_kernel(%arg0: memref<2x16x1xf32, #tpu.memory_space<vmem>>, %arg1: memref<3x32xf32, #tpu.memory_space<vmem>>, %arg2: memref<2x96x32xf32, #tpu.memory_space<vmem>>, %arg3: memref<3x1x32xf32, #tpu.memory_space<vmem>>, %arg4: memref<2x1x32xf32, #tpu.memory_space<vmem>>, %arg5: memref<2x1x32xf32, #tpu.memory_space<vmem>>, %arg6: memref<96x32xf32, #tpu.memory_space<vmem>>, %arg7: memref<1x32xf32, #tpu.memory_space<vmem>>, %arg8: memref<1x32xf32, #tpu.memory_space<vmem>>, %arg9: memref<1x1xf32, #tpu.memory_space<vmem>>, %arg10: memref<2x16xf32, #tpu.memory_space<vmem>>) attributes {dimension_semantics = [], scalar_prefetch = 0 : i64, scratch_operands = 0 : i64, tpu.core_type = #tpu.core_type<tc>} {
    %cst = arith.constant 0.000000e+00 : f32
    %0 = vector.broadcast %cst : f32 to vector<2x1x32xf32>
    %c0 = arith.constant 0 : index
    %c0_0 = arith.constant 0 : index
    %c0_1 = arith.constant 0 : index
    %1 = vector.load %arg0[%c0, %c0_0, %c0_1] : memref<2x16x1xf32, #tpu.memory_space<vmem>>, vector<2x16x1xf32>
    %c0_2 = arith.constant 0 : index
    %c0_3 = arith.constant 0 : index
    %2 = vector.load %arg1[%c0_2, %c0_3] : memref<3x32xf32, #tpu.memory_space<vmem>>, vector<1x32xf32>
    %3 = vector.shape_cast %2 : vector<1x32xf32> to vector<1x1x32xf32>
    %4 = vector.broadcast %1 : vector<2x16x1xf32> to vector<2x16x32xf32>
    %5 = vector.broadcast %3 : vector<1x1x32xf32> to vector<2x16x32xf32>
    %6 = arith.mulf %4, %5 : vector<2x16x32xf32>
    %c1 = arith.constant 1 : index
    %c0_4 = arith.constant 0 : index
    %7 = vector.load %arg1[%c1, %c0_4] : memref<3x32xf32, #tpu.memory_space<vmem>>, vector<1x32xf32>
    %8 = vector.shape_cast %7 : vector<1x32xf32> to vector<1x1x32xf32>
    %9 = vector.broadcast %1 : vector<2x16x1xf32> to vector<2x16x32xf32>
    %10 = vector.broadcast %8 : vector<1x1x32xf32> to vector<2x16x32xf32>
    %11 = arith.mulf %9, %10 : vector<2x16x32xf32>
    %c2 = arith.constant 2 : index
    %c0_5 = arith.constant 0 : index
    %12 = vector.load %arg1[%c2, %c0_5] : memref<3x32xf32, #tpu.memory_space<vmem>>, vector<1x32xf32>
    %13 = vector.shape_cast %12 : vector<1x32xf32> to vector<1x1x32xf32>
    %14 = vector.broadcast %1 : vector<2x16x1xf32> to vector<2x16x32xf32>
    %15 = vector.broadcast %13 : vector<1x1x32xf32> to vector<2x16x32xf32>
    %16 = arith.mulf %14, %15 : vector<2x16x32xf32>
    %17 = vector.extract_strided_slice %6 {offsets = [0, 0, 0], sizes = [2, 15, 32], strides = [1, 1, 1]} : vector<2x16x32xf32> to vector<2x15x32xf32>
    %18 = tpu.concatenate %0, %17 in 1 : vector<2x1x32xf32>, vector<2x15x32xf32> -> vector<2x16x32xf32>
    %19 = arith.addf %18, %11 : vector<2x16x32xf32>
    %20 = vector.extract_strided_slice %16 {offsets = [0, 1, 0], sizes = [2, 15, 32], strides = [1, 1, 1]} : vector<2x16x32xf32> to vector<2x15x32xf32>
    %21 = tpu.concatenate %20, %0 in 1 : vector<2x15x32xf32>, vector<2x1x32xf32> -> vector<2x16x32xf32>
    %22 = arith.addf %19, %21 : vector<2x16x32xf32>
    %c0_6 = arith.constant 0 : index
    %c0_7 = arith.constant 0 : index
    %c0_8 = arith.constant 0 : index
    %23 = vector.load %arg3[%c0_6, %c0_7, %c0_8] : memref<3x1x32xf32, #tpu.memory_space<vmem>>, vector<1x1x32xf32>
    %24 = vector.shape_cast %23 : vector<1x1x32xf32> to vector<1x32xf32>
    %25 = vector.shape_cast %24 : vector<1x32xf32> to vector<1x1x32xf32>
    %26 = vector.broadcast %25 : vector<1x1x32xf32> to vector<2x16x32xf32>
    %27 = arith.addf %22, %26 : vector<2x16x32xf32>
    %cst_9 = arith.constant 0.000000e+00 : f32
    %28 = vector.broadcast %cst_9 : f32 to vector<2x16x32xf32>
    %29 = arith.maximumf %27, %28 : vector<2x16x32xf32>
    %c0_10 = arith.constant 0 : index
    %c0_11 = arith.constant 0 : index
    %c0_12 = arith.constant 0 : index
    %30 = vector.load %arg4[%c0_10, %c0_11, %c0_12] : memref<2x1x32xf32, #tpu.memory_space<vmem>>, vector<1x1x32xf32>
    %31 = vector.shape_cast %30 : vector<1x1x32xf32> to vector<1x32xf32>
    %32 = vector.shape_cast %31 : vector<1x32xf32> to vector<1x1x32xf32>
    %33 = vector.broadcast %32 : vector<1x1x32xf32> to vector<2x16x32xf32>
    %34 = arith.mulf %29, %33 : vector<2x16x32xf32>
    %c0_13 = arith.constant 0 : index
    %c0_14 = arith.constant 0 : index
    %c0_15 = arith.constant 0 : index
    %35 = vector.load %arg5[%c0_13, %c0_14, %c0_15] : memref<2x1x32xf32, #tpu.memory_space<vmem>>, vector<1x1x32xf32>
    %36 = vector.shape_cast %35 : vector<1x1x32xf32> to vector<1x32xf32>
    %37 = vector.shape_cast %36 : vector<1x32xf32> to vector<1x1x32xf32>
    %38 = vector.broadcast %37 : vector<1x1x32xf32> to vector<2x16x32xf32>
    %39 = arith.addf %34, %38 : vector<2x16x32xf32>
    %40 = vector.extract_strided_slice %39 {offsets = [0, 0, 0], sizes = [2, 15, 32], strides = [1, 1, 1]} : vector<2x16x32xf32> to vector<2x15x32xf32>
    %41 = tpu.concatenate %0, %40 in 1 : vector<2x1x32xf32>, vector<2x15x32xf32> -> vector<2x16x32xf32>
    %42 = vector.extract_strided_slice %39 {offsets = [0, 1, 0], sizes = [2, 15, 32], strides = [1, 1, 1]} : vector<2x16x32xf32> to vector<2x15x32xf32>
    %43 = tpu.concatenate %42, %0 in 1 : vector<2x15x32xf32>, vector<2x1x32xf32> -> vector<2x16x32xf32>
    %44 = tpu.concatenate %41, %39, %43 in 2 : vector<2x16x32xf32>, vector<2x16x32xf32>, vector<2x16x32xf32> -> vector<2x16x96xf32>
    %45 = vector.shape_cast %44 : vector<2x16x96xf32> to vector<32x96xf32>
    %c0_16 = arith.constant 0 : index
    %c0_17 = arith.constant 0 : index
    %c0_18 = arith.constant 0 : index
    %46 = vector.load %arg2[%c0_16, %c0_17, %c0_18] : memref<2x96x32xf32, #tpu.memory_space<vmem>>, vector<1x96x32xf32>
    %47 = vector.shape_cast %46 : vector<1x96x32xf32> to vector<96x32xf32>
    %cst_19 = arith.constant dense<0.000000e+00> : vector<32x32xf32>
    %48 = tpu.matmul %45, %47, %cst_19 {dimension_numbers = #tpu.dot_dimension_numbers<[1], [0], [0], [1], [0, 0, 1, 1], [], []>} : vector<32x96xf32>, vector<96x32xf32>, vector<32x32xf32> -> vector<32x32xf32>
    %c1_20 = arith.constant 1 : index
    %c0_21 = arith.constant 0 : index
    %c0_22 = arith.constant 0 : index
    %49 = vector.load %arg3[%c1_20, %c0_21, %c0_22] : memref<3x1x32xf32, #tpu.memory_space<vmem>>, vector<1x1x32xf32>
    %50 = vector.shape_cast %49 : vector<1x1x32xf32> to vector<1x32xf32>
    %51 = vector.broadcast %50 : vector<1x32xf32> to vector<32x32xf32>
    %52 = arith.addf %48, %51 : vector<32x32xf32>
    %cst_23 = arith.constant 0.000000e+00 : f32
    %53 = vector.broadcast %cst_23 : f32 to vector<32x32xf32>
    %54 = arith.maximumf %52, %53 : vector<32x32xf32>
    %c1_24 = arith.constant 1 : index
    %c0_25 = arith.constant 0 : index
    %c0_26 = arith.constant 0 : index
    %55 = vector.load %arg4[%c1_24, %c0_25, %c0_26] : memref<2x1x32xf32, #tpu.memory_space<vmem>>, vector<1x1x32xf32>
    %56 = vector.shape_cast %55 : vector<1x1x32xf32> to vector<1x32xf32>
    %57 = vector.broadcast %56 : vector<1x32xf32> to vector<32x32xf32>
    %58 = arith.mulf %54, %57 : vector<32x32xf32>
    %c1_27 = arith.constant 1 : index
    %c0_28 = arith.constant 0 : index
    %c0_29 = arith.constant 0 : index
    %59 = vector.load %arg5[%c1_27, %c0_28, %c0_29] : memref<2x1x32xf32, #tpu.memory_space<vmem>>, vector<1x1x32xf32>
    %60 = vector.shape_cast %59 : vector<1x1x32xf32> to vector<1x32xf32>
    %61 = vector.broadcast %60 : vector<1x32xf32> to vector<32x32xf32>
    %62 = arith.addf %58, %61 : vector<32x32xf32>
    %63 = vector.shape_cast %62 : vector<32x32xf32> to vector<2x16x32xf32>
    %64 = vector.extract_strided_slice %63 {offsets = [0, 0, 0], sizes = [2, 15, 32], strides = [1, 1, 1]} : vector<2x16x32xf32> to vector<2x15x32xf32>
    %65 = tpu.concatenate %0, %64 in 1 : vector<2x1x32xf32>, vector<2x15x32xf32> -> vector<2x16x32xf32>
    %66 = vector.extract_strided_slice %63 {offsets = [0, 1, 0], sizes = [2, 15, 32], strides = [1, 1, 1]} : vector<2x16x32xf32> to vector<2x15x32xf32>
    %67 = tpu.concatenate %66, %0 in 1 : vector<2x15x32xf32>, vector<2x1x32xf32> -> vector<2x16x32xf32>
    %68 = tpu.concatenate %65, %63, %67 in 2 : vector<2x16x32xf32>, vector<2x16x32xf32>, vector<2x16x32xf32> -> vector<2x16x96xf32>
    %69 = vector.shape_cast %68 : vector<2x16x96xf32> to vector<32x96xf32>
    %c1_30 = arith.constant 1 : index
    %c0_31 = arith.constant 0 : index
    %c0_32 = arith.constant 0 : index
    %70 = vector.load %arg2[%c1_30, %c0_31, %c0_32] : memref<2x96x32xf32, #tpu.memory_space<vmem>>, vector<1x96x32xf32>
    %71 = vector.shape_cast %70 : vector<1x96x32xf32> to vector<96x32xf32>
    %cst_33 = arith.constant dense<0.000000e+00> : vector<32x32xf32>
    %72 = tpu.matmul %69, %71, %cst_33 {dimension_numbers = #tpu.dot_dimension_numbers<[1], [0], [0], [1], [0, 0, 1, 1], [], []>} : vector<32x96xf32>, vector<96x32xf32>, vector<32x32xf32> -> vector<32x32xf32>
    %c2_34 = arith.constant 2 : index
    %c0_35 = arith.constant 0 : index
    %c0_36 = arith.constant 0 : index
    %73 = vector.load %arg3[%c2_34, %c0_35, %c0_36] : memref<3x1x32xf32, #tpu.memory_space<vmem>>, vector<1x1x32xf32>
    %74 = vector.shape_cast %73 : vector<1x1x32xf32> to vector<1x32xf32>
    %75 = vector.broadcast %74 : vector<1x32xf32> to vector<32x32xf32>
    %76 = arith.addf %72, %75 : vector<32x32xf32>
    %cst_37 = arith.constant 0.000000e+00 : f32
    %77 = vector.broadcast %cst_37 : f32 to vector<32x32xf32>
    %78 = arith.maximumf %76, %77 : vector<32x32xf32>
    %79 = vector.shape_cast %78 : vector<32x32xf32> to vector<2x16x32xf32>
    %cst_38 = arith.constant 0.000000e+00 : f32
    %80 = vector.broadcast %cst_38 : f32 to vector<2x2x32xf32>
    %81 = vector.extract_strided_slice %79 {offsets = [0, 1, 0], sizes = [2, 15, 32], strides = [1, 1, 1]} : vector<2x16x32xf32> to vector<2x15x32xf32>
    %82 = tpu.concatenate %81, %0 in 1 : vector<2x15x32xf32>, vector<2x1x32xf32> -> vector<2x16x32xf32>
    %83 = vector.extract_strided_slice %79 {offsets = [0, 2, 0], sizes = [2, 14, 32], strides = [1, 1, 1]} : vector<2x16x32xf32> to vector<2x14x32xf32>
    %84 = tpu.concatenate %83, %80 in 1 : vector<2x14x32xf32>, vector<2x2x32xf32> -> vector<2x16x32xf32>
    %85 = tpu.concatenate %79, %82, %84 in 2 : vector<2x16x32xf32>, vector<2x16x32xf32>, vector<2x16x32xf32> -> vector<2x16x96xf32>
    %86 = vector.shape_cast %85 : vector<2x16x96xf32> to vector<32x96xf32>
    %c0_39 = arith.constant 0 : index
    %c0_40 = arith.constant 0 : index
    %87 = vector.load %arg6[%c0_39, %c0_40] : memref<96x32xf32, #tpu.memory_space<vmem>>, vector<96x32xf32>
    %cst_41 = arith.constant dense<0.000000e+00> : vector<32x32xf32>
    %88 = tpu.matmul %86, %87, %cst_41 {dimension_numbers = #tpu.dot_dimension_numbers<[1], [0], [0], [1], [0, 0, 1, 1], [], []>} : vector<32x96xf32>, vector<96x32xf32>, vector<32x32xf32> -> vector<32x32xf32>
    %c0_42 = arith.constant 0 : index
    %c0_43 = arith.constant 0 : index
    %89 = vector.load %arg7[%c0_42, %c0_43] : memref<1x32xf32, #tpu.memory_space<vmem>>, vector<1x32xf32>
    %90 = vector.broadcast %89 : vector<1x32xf32> to vector<32x32xf32>
    %91 = arith.addf %88, %90 : vector<32x32xf32>
    %cst_44 = arith.constant 0.000000e+00 : f32
    %92 = vector.broadcast %cst_44 : f32 to vector<32x32xf32>
    %93 = arith.maximumf %91, %92 : vector<32x32xf32>
    %94 = vector.shape_cast %93 : vector<32x32xf32> to vector<2x16x32xf32>
    %c0_45 = arith.constant 0 : index
    %c0_46 = arith.constant 0 : index
    %95 = vector.load %arg8[%c0_45, %c0_46] : memref<1x32xf32, #tpu.memory_space<vmem>>, vector<1x32xf32>
    %96 = vector.shape_cast %95 : vector<1x32xf32> to vector<1x1x32xf32>
    %97 = vector.broadcast %96 : vector<1x1x32xf32> to vector<2x16x32xf32>
    %98 = arith.mulf %94, %97 : vector<2x16x32xf32>
    %cst_47 = arith.constant dense<0.000000e+00> : vector<2x16xf32>
    %99 = vector.multi_reduction <add>, %98, %cst_47 [2] : vector<2x16x32xf32> to vector<2x16xf32>
    %c0_48 = arith.constant 0 : index
    %c0_49 = arith.constant 0 : index
    %100 = vector.load %arg9[%c0_48, %c0_49] : memref<1x1xf32, #tpu.memory_space<vmem>>, vector<1x1xf32>
    %101 = vector.broadcast %100 : vector<1x1xf32> to vector<2x16xf32>
    %102 = arith.addf %99, %101 : vector<2x16xf32>
    %c0_50 = arith.constant 0 : index
    %c0_51 = arith.constant 0 : index
    %103 = vector.load %arg10[%c0_50, %c0_51] : memref<2x16xf32, #tpu.memory_space<vmem>>, vector<2x16xf32>
    tpu.vector_store %arg10[%c0_50, %c0_51], %102 {strides = array<i32>} : memref<2x16xf32, #tpu.memory_space<vmem>>, vector<2x16xf32>,
    return
  }
}

</mosaic_0001>

<bundles_post_ra>
// kernel: tpu_custom_call.1
= control target key start
LH: loop header
LB: loop body
LE: loop exit
PB: predicated region body
PF: predicated region fallthrough
CT: control target
= control target key end

     0   :  { %s1365_s0 = inlined_call_operand.vmem [shape: f32[2,16,1], index: 0, kind: input, shape index: {}]   ;;  %s1366_s1 = inlined_call_operand.vmem [shape: f32[3,32], index: 1, kind: input, shape index: {}]   ;;  %s1367_s2 = inlined_call_operand.vmem [shape: f32[2,96,32], index: 2, kind: input, shape index: {}]   ;;  %s1368_s3 = inlined_call_operand.vmem [shape: f32[3,1,32], index: 3, kind: input, shape index: {}]   ;;  %s1369_s4 = inlined_call_operand.vmem [shape: f32[2,1,32], index: 4, kind: input, shape index: {}]   ;;  %s1370_s5 = inlined_call_operand.vmem [shape: f32[2,1,32], index: 5, kind: input, shape index: {}]   ;;  %s1371_s6 = inlined_call_operand.vmem [shape: f32[96,32], index: 6, kind: input, shape index: {}]   ;;  %s1372_s7 = inlined_call_operand.vmem [shape: f32[1,32], index: 7, kind: input, shape index: {}]   ;;  %s1373_s8 = inlined_call_operand.vmem [shape: f32[1,32], index: 8, kind: input, shape index: {}]   ;;  %s1374_s9 = inlined_call_operand.<no memory space> [shape: f32[1,1], index: 9, kind: input, shape index: {}]   ;;  %s1375_s10 = inlined_call_operand.hbm [shape: f32[2,16], index: 10, kind: output, shape index: {}]  }
   0x1   :  { %v15_v0 = vstv %s1374_s9 }
   0x2   :  { %16 = vst [vmem:[#allocation2] sm:$0x1] %v15_v0 }
   0x3   :  { %v40_v1 = vld [vmem:[%s1365_s0 + $0x10] sm:$0xff]  ;;  %v38_v2 = vld [vmem:[%s1365_s0] sm:$0xff]  ;;  %v1052_v3 = vmov 0  }
   0x4   :  { %1029 = vset.pattern.permute.xlu1 %v1052_v3  ;;  %1028 = vset.pattern.permute.xlu0 %v1052_v3 }
   0x5   :  { %55 = vperm.xlu1 %1029, %v40_v1   ;;  %45 = vperm.xlu0 %1028, %v38_v2  }
   0x6   :  { %17 = vsyncpa [#allocation4], 0  ;;  %v41_v4 = vld [vmem:[%s1365_s0 + $0x18] sm:$0xff]  ;;  %v39_v5 = vld [vmem:[%s1365_s0 + $0x8] sm:$0xff]  ;;  %vm93_vm0 = vcmask 1040384   ;;  %vm114_vm1 = vcmask 1046528  }
   0x7   :  { %v241_v6 = vld [vmem:[%s1367_s2 + $0x58] sm:$0xff]  ;;  %v240_v7 = vld [vmem:[%s1367_s2 + $0x50] sm:$0xff]  ;;  %v239_v8 = vld [vmem:[%s1367_s2 + $0x48] sm:$0xff]  ;;  %s1053_s14 = smov 32   ;;  %s1054_s15 = smov 64   ;;  %vm220_vm2 = vcmask 261120  }
   0x8   :  { %910 = vmatprep.subr.mxu0 %v241_v6  ;;  %v238_v9 = vld [vmem:[%s1367_s2 + $0x40] sm:$0xff]  ;;  %v237_v10 = vld [vmem:[%s1367_s2 + $0x38] sm:$0xff]  ;;  %v236_v11 = vld [vmem:[%s1367_s2 + $0x30] sm:$0xff]  ;;  %vm225_vm3 = vcmask 523264   ;;  %vm250_vm4 = vcmask 785408   ;;  %vm572_vm5 = vcmask 1045504  }
   0x9   :  { %60 = vperm.xlu1 %1029, %v41_v4   ;;  %50 = vperm.xlu0 %1028, %v39_v5   ;;  %v235_v12 = vld [vmem:[%s1367_s2 + $0x28] sm:$0xff]  ;;  %v821_v13 = vld [vmem:[%s1366_s1] ss:$0 sm:$0xff]  ;;  %v823_v16 = vld [vmem:[%s1366_s1 + $0x2] ss:$0 sm:$0xff]  ;;  %vm791_vm6 = vcmask 130112  }
   0xa   :  { %911 = vmatpush3.msra.mxu0 %v241_v6  ;;  %v822_v19 = vld [vmem:[%s1366_s1 + $0x1] ss:$0 sm:$0xff]  ;;  %v824_v49 = vld [vmem:[%s1368_s3] ss:$0 sm:$0xff]  ;;  %v233_v50 = vld [vmem:[%s1367_s2 + $0x18] sm:$0xff]  ;;  %vm802_vm7 = vcmask 1041409  }
   0xb   :  { %912 = vmatprep.subr.mxu0 %v240_v7  ;;  %v234_v44 = vld [vmem:[%s1367_s2 + $0x20] sm:$0xff]  ;;  %v232_v60 = vld [vmem:[%s1367_s2 + $0x10] sm:$0xff]  ;;  %v231_v0 = vld [vmem:[%s1367_s2 + $0x8] sm:$0xff]  ;;  %vm805_vm8 = vcmask 123904  }
   0xc   :  { %913 = vmatpush3.msra.mxu0 %v240_v7  ;;  %v825_v62 = vld [vmem:[%s1369_s4] ss:$0 sm:$0xff] }
   0xd   :  { %914 = vmatprep.subr.mxu0 %v239_v8  ;;  %v826_v4 = vld [vmem:[%s1370_s5] ss:$0 sm:$0xff] }
   0xe   :  { %915 = vmatpush3.msra.mxu0 %v239_v8  ;;  %v230_v6 = vld [vmem:[%s1367_s2] sm:$0xff] }
   0xf   :  { %916 = vmatprep.subr.mxu0 %v238_v9 }
  0x10   :  { %917 = vmatpush3.msra.mxu0 %v238_v9 }
  0x11   :  { %918 = vmatprep.subr.mxu0 %v237_v10 }
  0x12   :  { %919 = vmatpush3.msra.mxu0 %v237_v10 }
  0x13   :  { %920 = vmatprep.subr.mxu0 %v236_v11 }
  0x14   :  { %921 = vmatpush3.msra.mxu0 %v236_v11 }
  0x15   :  { %922 = vmatprep.subr.mxu0 %v235_v12 }
  0x16   :  { %923 = vmatpush3.msra.mxu0 %v235_v12 }
  0x17   :  { %924 = vmatprep.subr.mxu0 %v234_v44 }
  0x18   :  { %925 = vmatpush3.msra.mxu0 %v234_v44 }
  0x19   :  { %926 = vmatprep.subr.mxu0 %v233_v50 }
  0x1a   :  { %927 = vmatpush3.msra.mxu0 %v233_v50  ;;  %v846_v50 = vld [vmem:[%s1367_s2 + $0xa8] sm:$0xff] }
  0x1b   :  { %928 = vmatprep.subr.mxu0 %v232_v60 }
  0x1c   :  { %929 = vmatpush3.msra.mxu0 %v232_v60  ;;  %v838_v60 = vld [vmem:[%s1367_s2 + $0x68] sm:$0xff] }
  0x1d   :  { %930 = vmatprep.subr.mxu0 %v231_v0 }
  0x1e   :  { %931 = vmatpush3.msra.mxu0 %v231_v0 }
  0x1f   :  { %932 = vmatprep.subr.mxu0 %v230_v6 }
  0x20   :  { %933 = vmatpush3.msra.mxu0 %v230_v6 }
  0x80   :  { %v56_v14 = vpop.permute.xlu1 %55  ;;  %v46_v15 = vpop.permute.xlu0 %45 }
  0x81   :  { %v69_v17 = vmul.f32 %v821_v13, %v56_v14  ;;  %v67_v18 = vmul.f32 %v821_v13, %v46_v15  ;;  %v87_v20 = vmul.f32 %v823_v16, %v56_v14  ;;  %v78_v21 = vmul.f32 %v822_v19, %v56_v14 }
  0x82   :  { %v85_v27 = vmul.f32 %v823_v16, %v46_v15  ;;  %v76_v36 = vmul.f32 %v822_v19, %v46_v15 }
  0x83   :  { %v97_v22 = vrot.slane %v69_v17, 7  ;;  %v94_v23 = vrot.slane %v67_v18, 7  ;;  %v118_v29 = vrot.slane %v87_v20, 1 }
  0x84   :  { %v61_v24 = vpop.permute.xlu1 %60  ;;  %v51_v25 = vpop.permute.xlu0 %50  ;;  %v115_v40 = vrot.slane %v85_v27, 1 }
  0x85   :  { %v105_v26 = vsel %vm93_vm0, 0.0, %v97_v22  ;;  %v70_v28 = vmul.f32 %v821_v13, %v61_v24  ;;  %v88_v30 = vmul.f32 %v823_v16, %v61_v24  ;;  %v68_v31 = vmul.f32 %v821_v13, %v51_v25 }
  0x86   :  { %v108_v32 = vadd.f32 %v105_v26, %v78_v21  ;;  %v104_v33 = vsel %vm93_vm0, 0.0, %v94_v23  ;;  %v86_v35 = vmul.f32 %v823_v16, %v51_v25  ;;  %v79_v37 = vmul.f32 %v822_v19, %v61_v24 }
  0x87   :  { %v98_v34 = vrot.slane %v70_v28, 7  ;;  %v119_v38 = vrot.slane %v88_v30, 1  ;;  %v95_v39 = vrot.slane %v68_v31, 7  ;;  %v77_v42 = vmul.f32 %v822_v19, %v51_v25 }
  0x88   :  { %v116_v43 = vrot.slane %v86_v35, 1  ;;  %v106_v45 = vadd.f32 %v104_v33, %v76_v36 }
  0x89   :  { %v99_v41 = vsel %vm93_vm0, %v97_v22, %v98_v34  ;;  %v120_v47 = vsel %vm114_vm1, %v118_v29, %v119_v38  ;;  %v96_v48 = vsel %vm93_vm0, %v94_v23, %v95_v39  ;;  %v126_v51 = vsel %vm114_vm1, %v119_v38, 0.0 }
  0x8a   :  { %v109_v46 = vadd.f32 %v99_v41, %v79_v37  ;;  %v129_v52 = vadd.f32 %v120_v47, %v108_v32  ;;  %v107_v53 = vadd.f32 %v96_v48, %v77_v42  ;;  %v117_v54 = vsel %vm114_vm1, %v115_v40, %v116_v43  ;;  %v848_v48 = vld [vmem:[%s1367_s2 + $0xb8] sm:$0xff] }
  0x8b   :  { %v125_v56 = vsel %vm114_vm1, %v116_v43, 0.0  ;;  %v127_v57 = vadd.f32 %v117_v54, %v106_v45  ;;  %940 = vmatprep.subr.mxu1 %v848_v48  ;;  %v842_v54 = vld [vmem:[%s1367_s2 + $0x88] sm:$0xff] }
  0x8c   :  { %v130_v55 = vadd.f32 %v126_v51, %v109_v46  ;;  %v128_v58 = vadd.f32 %v125_v56, %v107_v53  ;;  %v140_v59 = vadd.f32 %v824_v49, %v129_v52  ;;  %941 = vmatpush3.msra.mxu1 %v848_v48  ;;  %v845_v51 = vld [vmem:[%s1367_s2 + $0xa0] sm:$0xff]  ;;  %v844_v52 = vld [vmem:[%s1367_s2 + $0x98] sm:$0xff]  ;;  %v843_v53 = vld [vmem:[%s1367_s2 + $0x90] sm:$0xff] }
  0x8d   :  { %v138_v61 = vadd.f32 %v824_v49, %v127_v57  ;;  %v840_v56 = vld [vmem:[%s1367_s2 + $0x78] sm:$0xff]  ;;  %v828_v57 = vld [vmem:[%s1368_s3 + $0x1] ss:$0 sm:$0xff] }
  0x8e   :  { %v141_v63 = vadd.f32 %v824_v49, %v130_v55  ;;  %v139_v1 = vadd.f32 %v824_v49, %v128_v58  ;;  %v144_v2 = vmax.f32 %v140_v59, 0.0  ;;  %v847_v49 = vld [vmem:[%s1367_s2 + $0xb0] sm:$0xff]  ;;  %v841_v55 = vld [vmem:[%s1367_s2 + $0x80] sm:$0xff] }
  0x8f   :  { %v142_v3 = vmax.f32 %v138_v61, 0.0  ;;  %942 = vmatprep.subr.mxu1 %v847_v49  ;;  %v839_v58 = vld [vmem:[%s1367_s2 + $0x70] sm:$0xff] }
  0x90   :  { %v145_v5 = vmax.f32 %v141_v63, 0.0  ;;  %v143_v7 = vmax.f32 %v139_v1, 0.0  ;;  %v155_v8 = vmul.f32 %v825_v62, %v144_v2  ;;  %943 = vmatpush3.msra.mxu1 %v847_v49  ;;  %v834_v63 = vld [vmem:[%s1369_s4 + $0x1] ss:$0 sm:$0xff] }
  0x91   :  { %v153_v9 = vmul.f32 %v825_v62, %v142_v3  ;;  %944 = vmatprep.subr.mxu1 %v846_v50 }
  0x92   :  { %v156_v10 = vmul.f32 %v825_v62, %v145_v5  ;;  %v154_v11 = vmul.f32 %v825_v62, %v143_v7  ;;  %v166_v12 = vadd.f32 %v826_v4, %v155_v8  ;;  %945 = vmatpush3.msra.mxu1 %v846_v50  ;;  %v837_v62 = vld [vmem:[%s1367_s2 + $0x60] sm:$0xff] }
  0x93   :  { %v164_v13 = vadd.f32 %v826_v4, %v153_v9  ;;  %946 = vmatprep.subr.mxu1 %v845_v51 }
  0x94   :  { %v167_v14 = vadd.f32 %v826_v4, %v156_v10  ;;  %v165_v15 = vadd.f32 %v826_v4, %v154_v11  ;;  %v175_v16 = vrot.slane %v166_v12, 7  ;;  %v187_v27 = vrot.slane %v166_v12, 1  ;;  %947 = vmatpush3.msra.mxu1 %v845_v51  ;;  %v836_v4 = vld [vmem:[%s1370_s5 + $0x1] ss:$0 sm:$0xff]  ;;  %v630_v51 = vld [vmem:[%s1371_s6 + $0x58] sm:$0xff] }
  0x95   :  { %194 = vrot.lane.b32.xlu0 %v164_v13, %s1053_s14  ;;  %v172_v18 = vrot.slane %v164_v13, 7  ;;  %v184_v23 = vrot.slane %v164_v13, 1  ;;  %948 = vmatprep.subr.mxu1 %v844_v52 }
  0x96   :  { %v176_v17 = vrot.slane %v167_v14, 7  ;;  %196 = vrot.lane.b32.xlu1 %v165_v15, %s1053_s14  ;;  %v173_v19 = vrot.slane %v165_v15, 7  ;;  %v185_v21 = vrot.slane %v165_v15, 1  ;;  %v188_v25 = vrot.slane %v167_v14, 1  ;;  %949 = vmatpush3.msra.mxu1 %v844_v52  ;;  %v629_v52 = vld [vmem:[%s1371_s6 + $0x50] sm:$0xff] }
  0x97   :  { %v182_v34 = vsel %vm93_vm0, 0.0, %v172_v18  ;;  %v183_v41 = vsel %vm93_vm0, 0.0, %v175_v16  ;;  %950 = vmatprep.subr.mxu1 %v843_v53  ;;  %970 = vmatprep.subr.mxu0 %v630_v51 }
  0x98   :  { %v177_v20 = vsel %vm93_vm0, %v175_v16, %v176_v17  ;;  %v174_v22 = vsel %vm93_vm0, %v172_v18, %v173_v19  ;;  %v186_v24 = vsel %vm114_vm1, %v184_v23, %v185_v21  ;;  %v192_v26 = vsel %vm114_vm1, %v185_v21, 0.0  ;;  %951 = vmatpush3.msra.mxu1 %v843_v53  ;;  %v628_v53 = vld [vmem:[%s1371_s6 + $0x48] sm:$0xff] }
  0x99   :  { %198 = vrot.lane.b32.xlu0 %v166_v12, %s1053_s14  ;;  %v189_v28 = vsel %vm114_vm1, %v187_v27, %v188_v25  ;;  %v193_v29 = vsel %vm114_vm1, %v188_v25, 0.0  ;;  %952 = vmatprep.subr.mxu1 %v842_v54 }
  0x9a   :  { %200 = vrot.lane.b32.xlu1 %v167_v14, %s1053_s14  ;;  %953 = vmatpush3.msra.mxu1 %v842_v54  ;;  %v627_v54 = vld [vmem:[%s1371_s6 + $0x40] sm:$0xff] }
  0x9b   :  { %954 = vmatprep.subr.mxu1 %v841_v55 }
  0x9c   :  { %955 = vmatpush3.msra.mxu1 %v841_v55  ;;  %v626_v55 = vld [vmem:[%s1371_s6 + $0x38] sm:$0xff] }
  0x9d   :  { %208 = vrot.lane.b32.xlu0 %v186_v24, %s1054_s15  ;;  %956 = vmatprep.subr.mxu1 %v840_v56 }
  0x9e   :  { %210 = vrot.lane.b32.xlu1 %v192_v26, %s1054_s15  ;;  %957 = vmatpush3.msra.mxu1 %v840_v56  ;;  %v625_v56 = vld [vmem:[%s1371_s6 + $0x30] sm:$0xff] }
  0x9f   :  { %958 = vmatprep.subr.mxu1 %v839_v58 }
  0xa0   :  { %959 = vmatpush3.msra.mxu1 %v839_v58  ;;  %v623_v58 = vld [vmem:[%s1371_s6 + $0x20] sm:$0xff] }
  0xa1   :  { %212 = vrot.lane.b32.xlu0 %v189_v28, %s1054_s15  ;;  %960 = vmatprep.subr.mxu1 %v838_v60 }
  0xa2   :  { %214 = vrot.lane.b32.xlu1 %v193_v29, %s1054_s15  ;;  %961 = vmatpush3.msra.mxu1 %v838_v60  ;;  %v622_v60 = vld [vmem:[%s1371_s6 + $0x18] sm:$0xff] }
  0xa3   :  { %962 = vmatprep.subr.mxu1 %v837_v62 }
  0xa4   :  { %963 = vmatpush3.msra.mxu1 %v837_v62 }
  0xa5   :  { %1000 = vmatprep.subr.mxu1 %v630_v51 }
 0x107   :  { %v195_v30 = vpop.permute.xlu0 %194 }
 0x108   :  { %v197_v31 = vpop.permute.xlu1 %196  ;;  %v221_v35 = vsel %vm220_vm2, %v182_v34, %v195_v30 }
 0x109   :  { %v222_v37 = vsel %vm220_vm2, %v174_v22, %v197_v31 }
 0x10b   :  { %v199_v32 = vpop.permute.xlu0 %198 }
 0x10c   :  { %v201_v33 = vpop.permute.xlu1 %200  ;;  %v223_v42 = vsel %vm220_vm2, %v183_v41, %v199_v32 }
 0x10d   :  { %v224_v44 = vsel %vm220_vm2, %v177_v20, %v201_v33 }
 0x10f   :  { %v209_v36 = vpop.permute.xlu0 %208 }
 0x110   :  { %v211_v38 = vpop.permute.xlu1 %210  ;;  %v226_v39 = vsel %vm225_vm3, %v221_v35, %v209_v36 }
 0x111   :  { %v227_v40 = vsel %vm225_vm3, %v222_v37, %v211_v38  ;;  %934 = vmatprep.mubr.msk.f32.mxu0 %vm250_vm4, %v226_v39 }
 0x112   :  { %935 = vmatmul.mubr.msk.f32.vlgmr.msra.gmra.mxu0 %vm250_vm4, %v227_v40 }
 0x113   :  { %v213_v43 = vpop.permute.xlu0 %212  ;;  %971 = vmatpush3.msra.mxu0 %v630_v51 }
 0x114   :  { %v228_v45 = vsel %vm225_vm3, %v223_v42, %v213_v43  ;;  %v215_v46 = vpop.permute.xlu1 %214  ;;  %972 = vmatprep.subr.mxu0 %v629_v52 }
 0x115   :  { %v229_v47 = vsel %vm225_vm3, %v224_v44, %v215_v46  ;;  %937 = vmatprep.mubr.msk.f32.mxu0 %vm250_vm4, %v228_v45  ;;  %973 = vmatpush3.msra.mxu0 %v629_v52 }
 0x116   :  { %938 = vmatmul.mubr.msk.f32.gmra.mxu0 %vm250_vm4, %v229_v47  ;;  %974 = vmatprep.subr.mxu0 %v628_v53 }
 0x117   :  { %975 = vmatpush3.msra.mxu0 %v628_v53 }
 0x118   :  { %976 = vmatprep.subr.mxu0 %v627_v54 }
 0x119   :  { %977 = vmatpush3.msra.mxu0 %v627_v54 }
 0x11a   :  { %978 = vmatprep.subr.mxu0 %v626_v55 }
 0x11b   :  { %979 = vmatpush3.msra.mxu0 %v626_v55 }
 0x11c   :  { %980 = vmatprep.subr.mxu0 %v625_v56 }
 0x11d   :  { %981 = vmatpush3.msra.mxu0 %v625_v56 }
 0x1d2   :  { %v936_v59 = vpop.f32.mrf.mxu0 }
 0x1d3   :  { %v335_v61 = vadd.f32 %v936_v59, %v828_v57  ;;  %v850_v59 = vld [vmem:[%s1368_s3 + $0x2] ss:$0 sm:$0xff] }
 0x1d4   :  { %v329_v0 = vpop.f32.mrf.mxu0 }
 0x1d5   :  { %v349_v1 = vmax.f32 %v335_v61, 0.0  ;;  %v330_v2 = vadd.f32 %v828_v57, %v329_v0  ;;  %v621_v61 = vld [vmem:[%s1371_s6 + $0x10] sm:$0xff] }
 0x1d6   :  { %v939_v3 = vpop.f32.mrf.mxu0 }
 0x1d7   :  { %v361_v5 = vmul.f32 %v834_v63, %v349_v1  ;;  %v348_v6 = vmax.f32 %v330_v2, 0.0  ;;  %v345_v7 = vadd.f32 %v939_v3, %v828_v57  ;;  %v620_v3 = vld [vmem:[%s1371_s6 + $0x8] sm:$0xff] }
 0x1d8   :  { %v339_v8 = vpop.f32.mrf.mxu0 }
 0x1d9   :  { %v360_v9 = vmul.f32 %v834_v63, %v348_v6  ;;  %v351_v10 = vmax.f32 %v345_v7, 0.0  ;;  %v340_v11 = vadd.f32 %v828_v57, %v339_v8  ;;  %v373_v12 = vadd.f32 %v836_v4, %v361_v5  ;;  %v624_v57 = vld [vmem:[%s1371_s6 + $0x28] sm:$0xff] }
 0x1da   :  { %982 = vmatprep.subr.mxu0 %v624_v57 }
 0x1db   :  { %v363_v13 = vmul.f32 %v834_v63, %v351_v10  ;;  %v350_v14 = vmax.f32 %v340_v11, 0.0  ;;  %404 = vrot.lane.b32.xlu1 %v373_v12, %s1053_s14  ;;  %v372_v15 = vadd.f32 %v836_v4, %v360_v9  ;;  %v393_v16 = vrot.slane %v373_v12, 1  ;;  %983 = vmatpush3.msra.mxu0 %v624_v57 }
 0x1dc   :  { %v381_v22 = vrot.slane %v373_v12, 7  ;;  %984 = vmatprep.subr.mxu0 %v623_v58 }
 0x1dd   :  { %v362_v17 = vmul.f32 %v834_v63, %v350_v14  ;;  %402 = vrot.lane.b32.xlu0 %v372_v15, %s1053_s14  ;;  %v400_v18 = vsel %vm114_vm1, %v393_v16, 0.0  ;;  %v392_v19 = vrot.slane %v372_v15, 1  ;;  %v375_v20 = vadd.f32 %v836_v4, %v363_v13  ;;  %985 = vmatpush3.msra.mxu0 %v623_v58 }
 0x1de   :  { %v380_v21 = vrot.slane %v372_v15, 7  ;;  %986 = vmatprep.subr.mxu0 %v622_v60 }
 0x1df   :  { %418 = vrot.lane.b32.xlu1 %v400_v18, %s1054_s15  ;;  %v394_v23 = vsel %vm114_vm1, %v392_v19, %v393_v16  ;;  %v374_v24 = vadd.f32 %v836_v4, %v362_v17  ;;  %v384_v27 = vrot.slane %v375_v20, 7  ;;  %v396_v28 = vrot.slane %v375_v20, 1  ;;  %987 = vmatpush3.msra.mxu0 %v622_v60  ;;  %v619_v4 = vld [vmem:[%s1371_s6] sm:$0xff] }
 0x1e0   :  { %v382_v25 = vsel %vm93_vm0, %v380_v21, %v381_v22  ;;  %v390_v36 = vsel %vm93_vm0, 0.0, %v380_v21  ;;  %988 = vmatprep.subr.mxu0 %v621_v61 }
 0x1e1   :  { %416 = vrot.lane.b32.xlu0 %v394_v23, %s1054_s15  ;;  %v383_v26 = vrot.slane %v374_v24, 7  ;;  %v395_v30 = vrot.slane %v374_v24, 1  ;;  %v401_v31 = vsel %vm114_vm1, %v396_v28, 0.0  ;;  %989 = vmatpush3.msra.mxu0 %v621_v61 }
 0x1e2   :  { %990 = vmatprep.subr.mxu0 %v620_v3 }
 0x1e3   :  { %408 = vrot.lane.b32.xlu1 %v375_v20, %s1053_s14  ;;  %v385_v29 = vsel %vm93_vm0, %v383_v26, %v384_v27  ;;  %v397_v32 = vsel %vm114_vm1, %v395_v30, %v396_v28  ;;  %v391_v44 = vsel %vm93_vm0, 0.0, %v383_v26  ;;  %991 = vmatpush3.msra.mxu0 %v620_v3 }
 0x1e4   :  { %992 = vmatprep.subr.mxu0 %v619_v4 }
 0x1e5   :  { %406 = vrot.lane.b32.xlu0 %v374_v24, %s1053_s14  ;;  %993 = vmatpush3.msra.mxu0 %v619_v4 }
 0x1e7   :  { %422 = vrot.lane.b32.xlu1 %v401_v31, %s1054_s15 }
 0x1e9   :  { %420 = vrot.lane.b32.xlu0 %v397_v32, %s1054_s15 }
 0x24d   :  { %v405_v33 = vpop.permute.xlu1 %404 }
 0x24e   :  { %v429_v39 = vsel %vm220_vm2, %v382_v25, %v405_v33 }
 0x24f   :  { %v403_v34 = vpop.permute.xlu0 %402 }
 0x250   :  { %v428_v37 = vsel %vm220_vm2, %v390_v36, %v403_v34 }
 0x251   :  { %v419_v35 = vpop.permute.xlu1 %418 }
 0x252   :  { %v433_v41 = vsel %vm225_vm3, %v429_v39, %v419_v35 }
 0x253   :  { %v417_v38 = vpop.permute.xlu0 %416 }
 0x254   :  { %v432_v40 = vsel %vm225_vm3, %v428_v37, %v417_v38 }
 0x255   :  { %v409_v42 = vpop.permute.xlu1 %408  ;;  %964 = vmatprep.mubr.msk.f32.mxu1 %vm250_vm4, %v432_v40 }
 0x256   :  { %965 = vmatmul.mubr.msk.f32.vlgmr.msra.gmra.mxu1 %vm250_vm4, %v433_v41  ;;  %v431_v48 = vsel %vm220_vm2, %v385_v29, %v409_v42 }
 0x257   :  { %v407_v43 = vpop.permute.xlu0 %406  ;;  %1012 = vmatpush3.msra.mxu1 %v630_v51 }
 0x258   :  { %v430_v46 = vsel %vm220_vm2, %v391_v44, %v407_v43  ;;  %1001 = vmatprep.subr.mxu1 %v629_v52  ;;  %v855_v44 = vld [vmem:[%s1372_s7] ss:$0 sm:$0xff]  ;;  %s1055_s7 = smov [#allocation3]  }
 0x259   :  { %v423_v45 = vpop.permute.xlu1 %422  ;;  %1013 = vmatpush3.msra.mxu1 %v629_v52 }
 0x25a   :  { %v435_v50 = vsel %vm225_vm3, %v431_v48, %v423_v45  ;;  %1002 = vmatprep.subr.mxu1 %v628_v53  ;;  %v860_v48 = vld [vmem:[%s1373_s8] ss:$0 sm:$0xff]  ;;  %s813_s8 = sshll.u32 %s1055_s7, 4  ;;  %s814_s8 = int_to_ptr.vmem [resolvable:$true] %s813_s8 }
 0x25b   :  { %v421_v47 = vpop.permute.xlu0 %420  ;;  %1014 = vmatpush3.msra.mxu1 %v628_v53  ;;  %s1030_s5 = scalar_lea.vmem %s814_s8, 32  ;;  %p1035_p1 = scmp.lt.s32.totalorder %s814_s8, %s814_s8 }
 0x25c   :  { %v434_v49 = vsel %vm225_vm3, %v430_v46, %v421_v47  ;;  %1003 = vmatprep.subr.mxu1 %v627_v54  ;;  %p1031_p0 = scmp.ne.s32.totalorder %s814_s8, %s1030_s5  ;;  %p1036_p2 = scmp.lt.s32.totalorder %s1030_s5, %s1030_s5 }
 0x25d   :  { %967 = vmatprep.mubr.msk.f32.mxu1 %vm250_vm4, %v434_v49  ;;  %1015 = vmatpush3.msra.mxu1 %v627_v54 }
 0x25e   :  { %968 = vmatmul.mubr.msk.f32.gmra.mxu1 %vm250_vm4, %v435_v50  ;;  %1004 = vmatprep.subr.mxu1 %v626_v55  ;;  %p1037_p3 = por %p1036_p2, %p1035_p1 }
 0x25f   :  { %1016 = vmatpush3.msra.mxu1 %v626_v55 }
 0x260   :  { %1005 = vmatprep.subr.mxu1 %v625_v56  ;;  %p1038_p4 = pnand %p1037_p3, %p1031_p0 }
 0x261   :  { %1017 = vmatpush3.msra.mxu1 %v625_v56 }
 0x262   :  { %1006 = vmatprep.subr.mxu1 %v624_v57 }
 0x263   :  { %1018 = vmatpush3.msra.mxu1 %v624_v57 }
 0x264   :  { %1007 = vmatprep.subr.mxu1 %v623_v58 }
 0x265   :  { %1019 = vmatpush3.msra.mxu1 %v623_v58 }
 0x266   :  { %1008 = vmatprep.subr.mxu1 %v622_v60 }
 0x267   :  { %1020 = vmatpush3.msra.mxu1 %v622_v60 }
 0x268   :  { %1009 = vmatprep.subr.mxu1 %v621_v61 }
 0x269   :  { %1021 = vmatpush3.msra.mxu1 %v621_v61 }
 0x26a   :  { %1010 = vmatprep.subr.mxu1 %v620_v3 }
 0x26b   :  { %1022 = vmatpush3.msra.mxu1 %v620_v3  ;;  %v780_v3 = vlaneseq }
 0x26c   :  { %1011 = vmatprep.subr.mxu1 %v619_v4 }
 0x26d   :  { %1023 = vmatpush3.msra.mxu1 %v619_v4 }
 0x316   :  { %v966_v62 = vpop.f32.mrf.mxu1 }
 0x317   :  { %v541_v63 = vadd.f32 %v966_v62, %v850_v59 }
 0x318   :  { %v535_v0 = vpop.f32.mrf.mxu1 }
 0x319   :  { %v555_v1 = vmax.f32 %v541_v63, 0.0  ;;  %v536_v2 = vadd.f32 %v850_v59, %v535_v0 }
 0x31b   :  { %v554_v5 = vmax.f32 %v536_v2, 0.0  ;;  %v563_v6 = vrot.slane %v555_v1, 1  ;;  %v574_v16 = vrot.slane %v555_v1, 2  ;;  %v861_v2 = vld [vmem:[#allocation2] ss:$0 sm:$0xff] }
 0x31d   :  { %v562_v7 = vrot.slane %v554_v5, 1  ;;  %v570_v8 = vsel %vm114_vm1, %v563_v6, 0.0  ;;  %v573_v12 = vrot.slane %v554_v5, 2  ;;  %v581_v24 = vsel %vm572_vm5, %v574_v16, 0.0 }
 0x31e   :  { %587 = vrot.lane.b32.xlu0 %v570_v8, %s1053_s14  ;;  %v969_v9 = vpop.f32.mrf.mxu1 }
 0x31f   :  { %v551_v10 = vadd.f32 %v969_v9, %v850_v59  ;;  %v564_v15 = vsel %vm114_vm1, %v562_v7, %v563_v6  ;;  %v575_v21 = vsel %vm572_vm5, %v573_v12, %v574_v16  ;;  %v783_v7 = vshrl.u32 %v780_v3, 7 }
 0x320   :  { %v545_v11 = vpop.f32.mrf.mxu1 }
 0x321   :  { %v557_v13 = vmax.f32 %v551_v10, 0.0  ;;  %v546_v14 = vadd.f32 %v850_v59, %v545_v11 }
 0x322   :  { %585 = vrot.lane.b32.xlu0 %v564_v15, %s1053_s14 }
 0x323   :  { %v556_v17 = vmax.f32 %v546_v14, 0.0  ;;  %v566_v18 = vrot.slane %v557_v13, 1  ;;  %v577_v25 = vrot.slane %v557_v13, 2 }
 0x325   :  { %v565_v19 = vrot.slane %v556_v17, 1  ;;  %v571_v20 = vsel %vm114_vm1, %v566_v18, 0.0  ;;  %v576_v22 = vrot.slane %v556_v17, 2  ;;  %v582_v27 = vsel %vm572_vm5, %v577_v25, 0.0 }
 0x326   :  { %591 = vrot.lane.b32.xlu1 %v571_v20, %s1053_s14  ;;  %599 = vrot.lane.b32.xlu0 %v575_v21, %s1054_s15 }
 0x327   :  { %v567_v23 = vsel %vm114_vm1, %v565_v19, %v566_v18  ;;  %v578_v26 = vsel %vm572_vm5, %v576_v22, %v577_v25 }
 0x32a   :  { %589 = vrot.lane.b32.xlu1 %v567_v23, %s1053_s14  ;;  %601 = vrot.lane.b32.xlu0 %v581_v24, %s1054_s15 }
 0x32e   :  { %603 = vrot.lane.b32.xlu1 %v578_v26, %s1054_s15 }
 0x332   :  { %605 = vrot.lane.b32.xlu1 %v582_v27, %s1054_s15 }
 0x390   :  { %v588_v28 = vpop.permute.xlu0 %587 }
 0x391   :  { %v612_v34 = vsel %vm220_vm2, %v555_v1, %v588_v28 }
 0x394   :  { %v586_v29 = vpop.permute.xlu0 %585 }
 0x395   :  { %v611_v30 = vsel %vm220_vm2, %v554_v5, %v586_v29  ;;  %v781_v5 = vand.u32 127, %v780_v3 }
 0x397   :  { %v786_v8 = vadd.s32 4294967288, %v781_v5 }
 0x398   :  { %v592_v31 = vpop.permute.xlu1 %591  ;;  %v600_v32 = vpop.permute.xlu0 %599 }
 0x399   :  { %v615_v33 = vsel %vm225_vm3, %v611_v30, %v600_v32  ;;  %v614_v41 = vsel %vm220_vm2, %v557_v13, %v592_v31  ;;  %v784_v13 = vsub.s32 %v781_v5, %v783_v7  ;;  %v789_v14 = vsub.s32 %v786_v8, %v783_v7 }
 0x39a   :  { %994 = vmatprep.mubr.msk.f32.mxu0 %vm250_vm4, %v615_v33 }
 0x39c   :  { %v590_v35 = vpop.permute.xlu1 %589  ;;  %v602_v36 = vpop.permute.xlu0 %601 }
 0x39d   :  { %v616_v37 = vsel %vm225_vm3, %v612_v34, %v602_v36  ;;  %v613_v38 = vsel %vm220_vm2, %v556_v17, %v590_v35 }
 0x39e   :  { %995 = vmatmul.mubr.msk.f32.vlgmr.msra.gmra.mxu0 %vm250_vm4, %v616_v37 }
 0x3a0   :  { %v604_v39 = vpop.permute.xlu1 %603 }
 0x3a1   :  { %v617_v40 = vsel %vm225_vm3, %v613_v38, %v604_v39 }
 0x3a2   :  { %997 = vmatprep.mubr.msk.f32.mxu1 %vm250_vm4, %v617_v40 }
 0x3a4   :  { %v606_v42 = vpop.permute.xlu1 %605 }
 0x3a5   :  { %v618_v43 = vsel %vm225_vm3, %v614_v41, %v606_v42 }
 0x3a6   :  { %998 = vmatmul.mubr.msk.f32.vlgmr.msra.gmra.mxu1 %vm250_vm4, %v618_v43 }
 0x45e   :  { %v996_v45 = vpop.f32.mrf.mxu0 }
 0x45f   :  { %v722_v46 = vadd.f32 %v996_v45, %v855_v44 }
 0x460   :  { %v716_v47 = vpop.f32.mrf.mxu0 }
 0x461   :  { %v736_v49 = vmax.f32 %v722_v46, 0.0  ;;  %v717_v50 = vadd.f32 %v855_v44, %v716_v47 }
 0x463   :  { %v735_v51 = vmax.f32 %v717_v50, 0.0  ;;  %v747_v52 = vmul.f32 %v860_v48, %v736_v49 }
 0x465   :  { %v753_v53 = vsel %vm220_vm2, %v747_v52, 0.0  ;;  %v746_v54 = vmul.f32 %v860_v48, %v735_v51 }
 0x466   :  { %v999_v55 = vpop.f32.mrf.mxu1  ;;  %754 = vadd.xlane.f32.xlu1 %v753_v53 }
 0x467   :  { %v732_v56 = vadd.f32 %v999_v55, %v855_v44  ;;  %v750_v57 = vsel %vm220_vm2, %v746_v54, 0.0 }
 0x468   :  { %v726_v58 = vpop.f32.mrf.mxu1  ;;  %751 = vadd.xlane.f32.xlu0 %v750_v57 }
 0x469   :  { %v727_v59 = vadd.f32 %v855_v44, %v726_v58  ;;  %v738_v60 = vmax.f32 %v732_v56, 0.0 }
 0x46b   :  { %v737_v61 = vmax.f32 %v727_v59, 0.0  ;;  %v749_v0 = vmul.f32 %v860_v48, %v738_v60 }
 0x46d   :  { %v748_v62 = vmul.f32 %v860_v48, %v737_v61  ;;  %v759_v1 = vsel %vm220_vm2, %v749_v0, 0.0 }
 0x46f   :  { %v756_v63 = vsel %vm220_vm2, %v748_v62, 0.0 }
 0x470   :  { %757 = vadd.xlane.f32.xlu0 %v756_v63 }
 0x474   :  { %760 = vadd.xlane.f32.xlu0 %v759_v1 }
 0x477   :  { %769 = vperm.xlu1 %1029, %v861_v2  }
 0x4ef   :  { %v755_v4 = vpop.xlane.xlu1 %754 }
 0x4f1   :  { %v752_v6 = vpop.xlane.xlu0 %751 }
 0x4f3   :  { %v770_v9 = vpop.permute.xlu1 %769 }
 0x4f4   :  { %v772_v11 = vadd.f32 %v770_v9, %v752_v6  ;;  %v773_v12 = vadd.f32 %v770_v9, %v755_v4 }
 0x4f6   :  { %v785_v17 = vrot.slane %v772_v11, %v784_v13  ;;  %v790_v18 = vrot.slane %v773_v12, %v789_v14 }
 0x4f8   :  { %v792_v22 = vsel %vm791_vm6, %v790_v18, %v785_v17 }
 0x4f9   :  { %v758_v10 = vpop.xlane.xlu0 %757 }
 0x4fa   :  { %v774_v15 = vadd.f32 %v770_v9, %v758_v10 }
 0x4fc   :  { %v796_v20 = vrot.slane %v774_v15, %v784_v13 }
 0x4fd   :  { %v761_v16 = vpop.xlane.xlu0 %760 }
 0x4fe   :  { %v775_v19 = vadd.f32 %v770_v9, %v761_v16 }
 0x500   :  { %v800_v21 = vrot.slane %v775_v19, %v789_v14 }
 0x502   :  { %v801_v23 = vsel %vm791_vm6, %v800_v21, %v796_v20 }
 0x503   :  { %v803_v24 = vsel %vm802_vm7, %v801_v23, %v792_v22 }
 0x504   :  { %806 = vst.msk [vmem:[#allocation3] sm:$0x3] %vm805_vm8, %v803_v24 }
 0x505   :  { %1041 = shalt.err (!%p1038_p4)
}
 0x506   :  { %816 = dma.vmem_to_hbm [thread:$0]  %s814_s8, 32, %s1375_s10, [#allocation4]  }
 0x507   :  { %1050 = dma.done.wait [#allocation4], 32  }
 0x508   :  { %1051 = vsyncadd [#allocation4], 4294967264 }
 0x509   :  { %820 = vsyncpa [#allocation4], 1 }

</bundles_post_ra>
